<compile_context>
chip_gen: v7x
topology: tpu7x:2x2x1
jax: 0.10.0
libtpu: 0.0.40
codegen_flags: <defaults>
</compile_context>

<pallas_src>
import jax
import jax.numpy as jnp
from jax.experimental import pallas as pl
from jax.experimental.pallas import tpu as pltpu


def _round_up(x, m):
    return (x + m - 1) // m * m


# ---------------------------------------------------------------------------
# Kernel 1: batched input projection   gx = X @ W_ih + (b_ih + b_hh)
# ---------------------------------------------------------------------------
def input_proj_kernel(x_ref, w_ref, b_ref, gx_ref):
    gx_ref[...] = (
        jnp.dot(x_ref[...], w_ref[...], preferred_element_type=jnp.float32)
        + b_ref[...])


# ---------------------------------------------------------------------------
# Kernel 2: LSTM recurrence over time chunks + final linear head
# ---------------------------------------------------------------------------
def make_recurrence_kernel(t_chunk, b_block, hidden):
    H = hidden

    def kernel(gx_ref, whh_ref, h0_ref, wout_ref, bout_ref, out_ref,
               h_scr, c_scr):
        tc = pl.program_id(1)

        @pl.when(tc == 0)
        def _init():
            h_scr[...] = h0_ref[...]
            c_scr[...] = jnp.zeros_like(c_scr)

        # Hoisted loads: loaded once per grid step, not per timestep.
        whh = whh_ref[...]                        # (H, 4H) bf16, resident
        h = h_scr[...]                            # (Bb, H)  f32
        c = c_scr[...]                            # (Bb, H)  f32

        # Short, statically-unrolled recurrence: only h @ W_hh is serial.
        for t in range(t_chunk):
            gates = gx_ref[t] + jnp.dot(h.astype(whh.dtype), whh,
                                        preferred_element_type=jnp.float32)
            sg = jax.nn.sigmoid(gates[:, :3 * H])      # (i, f, o) contiguous
            g = jnp.tanh(gates[:, 3 * H:])             # g
            c = sg[:, H:2 * H] * c + sg[:, :H] * g     # c = f*c + i*g
            h = sg[:, 2 * H:3 * H] * jnp.tanh(c)       # h = o*tanh(c)

        h_scr[...] = h
        c_scr[...] = c

        @pl.when(tc == pl.num_programs(1) - 1)
        def _finalize():
            wout = wout_ref[...]                       # (H, Cp) bf16
            out_ref[...] = (
                jnp.dot(h.astype(wout.dtype), wout,
                        preferred_element_type=jnp.float32) + bout_ref[...])

    return kernel


# ---------------------------------------------------------------------------
# Wrapper
# ---------------------------------------------------------------------------
def rnn_classifier_forward(tokens, params, h0, *, t_chunk=8):
    """tokens: (B, T) int32. Returns logits (B, n_classes) float32."""
    emb_table = params["embedding"]          # (vocab, E) f32
    W_ih = params["W_ih"]                    # (E, 4H)  gate order (i, f, g, o)
    W_hh = params["W_hh"]                    # (H, 4H)
    b = params["b"]                          # (1, 4H)  (b_ih + b_hh combined)
    W_out = params["W_out"]                  # (H, C)
    b_out = params["b_out"]                  # (1, C)

    B, T = tokens.shape
    E = emb_table.shape[1]
    H = W_hh.shape[0]
    C = W_out.shape[1]

    Bb = 8                                   # batch block (sublane tile)
    Bp = _round_up(B, Bb)                    # padded batch
    Cp = _round_up(C, 128)                   # lane-dense logits
    # Largest time-chunk <= t_chunk that divides T (no recurrence padding).
    Tc = next(d for d in range(min(t_chunk, T), 0, -1) if T % d == 0)

    # --- one-time layout transforms (plain-JAX glue) ---
    # Permute gate columns (i, f, g, o) -> (i, f, o, g) consistently on
    # W_ih, W_hh and the bias.
    def perm_gates(w):
        return jnp.concatenate(
            [w[..., 0:H], w[..., H:2 * H], w[..., 3 * H:4 * H],
             w[..., 2 * H:3 * H]], axis=-1)

    W_ih_k = perm_gates(W_ih).astype(jnp.bfloat16)
    W_hh_k = perm_gates(W_hh).astype(jnp.bfloat16)
    b_k = perm_gates(b).astype(jnp.float32)

    # Embedding gather folded with the time-major transpose (no extra pass).
    emb = jnp.take(emb_table, tokens.T, axis=0)            # (T, B, E)
    emb = jnp.pad(emb, ((0, 0), (0, Bp - B), (0, 0)))      # (T, Bp, E)
    emb2d = emb.reshape(T * Bp, E).astype(jnp.bfloat16)    # (T*Bp, E)

    h0_k = jnp.pad(h0, ((0, Bp - B), (0, 0))).astype(jnp.float32)
    W_out_k = jnp.pad(W_out, ((0, 0), (0, Cp - C))).astype(jnp.bfloat16)
    b_out_k = jnp.pad(b_out, ((0, 0), (0, Cp - C))).astype(jnp.float32)

    # Leave headroom under v7x's 64 MiB physical VMEM per TensorCore.
    vmem_limit = 48 * 1024 * 1024

    # ---- Kernel 1: batched input projection over all timesteps ----
    TM = Tc * Bp                                            # row tile
    gx2d = pl.pallas_call(
        input_proj_kernel,
        out_shape=jax.ShapeDtypeStruct((T * Bp, 4 * H), jnp.float32),
        grid_spec=pltpu.PrefetchScalarGridSpec(
            num_scalar_prefetch=0,
            grid=(T * Bp // TM,),
            in_specs=[pl.BlockSpec((TM, E), lambda m: (m, 0)),
                      pl.BlockSpec((E, 4 * H), lambda m: (0, 0)),
                      pl.BlockSpec((1, 4 * H), lambda m: (0, 0))],
            out_specs=pl.BlockSpec((TM, 4 * H), lambda m: (m, 0))),
        compiler_params=pltpu.CompilerParams(
            dimension_semantics=("parallel",),
            vmem_limit_bytes=vmem_limit),
    )(emb2d, W_ih_k, b_k)
    gx = gx2d.reshape(T, Bp, 4 * H)                         # time-major gates

    # ---- Kernel 2: recurrence, batch-parallel x time-arbitrary grid ----
    n_bb = Bp // Bb
    n_tc = T // Tc
    kernel = make_recurrence_kernel(Tc, Bb, H)
    logits_p = pl.pallas_call(
        kernel,
        out_shape=jax.ShapeDtypeStruct((Bp, Cp), jnp.float32),
        grid_spec=pltpu.PrefetchScalarGridSpec(
            num_scalar_prefetch=0,
            grid=(n_bb, n_tc),
            in_specs=[
                pl.BlockSpec((Tc, Bb, 4 * H), lambda bb, t: (t, bb, 0)),
                pl.BlockSpec((H, 4 * H), lambda bb, t: (0, 0)),
                pl.BlockSpec((Bb, H), lambda bb, t: (bb, 0)),
                pl.BlockSpec((H, Cp), lambda bb, t: (0, 0)),
                pl.BlockSpec((1, Cp), lambda bb, t: (0, 0)),
            ],
            out_specs=pl.BlockSpec((Bb, Cp), lambda bb, t: (bb, 0)),
            scratch_shapes=[pltpu.VMEM((Bb, H), jnp.float32),   # h carry
                            pltpu.VMEM((Bb, H), jnp.float32)]), # c carry
        compiler_params=pltpu.CompilerParams(
            dimension_semantics=("parallel", "arbitrary"),
            vmem_limit_bytes=vmem_limit),
    )(gx, W_hh_k, h0_k, W_out_k, b_out_k)

    return logits_p[:B, :C]


def init_params(key, vocab_size, embed_len, hidden_dim, n_classes):
    ks = jax.random.split(key, 7)
    scale = 1.0 / jnp.sqrt(hidden_dim).astype(jnp.float32)
    params = {
        "embedding": jax.random.normal(ks[0], (vocab_size, embed_len),
                                       jnp.float32),
        # Gate order (i, f, g, o) -- PyTorch convention; permuted in wrapper.
        "W_ih": scale * jax.random.normal(ks[1], (embed_len, 4 * hidden_dim),
                                          jnp.float32),
        "W_hh": scale * jax.random.normal(ks[2], (hidden_dim, 4 * hidden_dim),
                                          jnp.float32),
        "b": scale * jax.random.normal(ks[3], (1, 4 * hidden_dim),
                                       jnp.float32),
        "W_out": scale * jax.random.normal(ks[4], (hidden_dim, n_classes),
                                           jnp.float32),
        "b_out": scale * jax.random.normal(ks[5], (1, n_classes),
                                           jnp.float32),
    }
    return params, ks[6]


if __name__ == "__main__":
    # Small shapes consistent with the module's forward.
    vocab_size, embed_len, hidden_dim, n_layers, n_classes = 100, 32, 32, 1, 4
    B, T = 2, 8

    key = jax.random.PRNGKey(0)
    key, k_tok, k_h0 = jax.random.split(key, 3)
    params, _ = init_params(key, vocab_size, embed_len, hidden_dim, n_classes)

    tokens = jax.random.randint(k_tok, (B, T), 0, vocab_size, dtype=jnp.int32)
    # torch.randn(n_layers, len(input), hidden_dim) -> take layer 0 as h0.
    h0_full = jax.random.normal(k_h0, (n_layers, B, hidden_dim), jnp.float32)
    h0 = h0_full[0]

    # t_chunk=4 so the chunked-recurrence (scratch-carried h/c) path is exercised.
    logits = rnn_classifier_forward(tokens, params, h0, t_chunk=4)
    jax.block_until_ready(logits)
    assert logits.shape == (B, n_classes)
    print("KERNEL_OK")
</pallas_src>

<mosaic_0001>
module attributes {stable_mosaic.version = 11 : i64} {
  func.func @input_proj_kernel(%arg0: i32, %arg1: memref<32x32xbf16, #tpu.memory_space<vmem>>, %arg2: memref<32x128xbf16, #tpu.memory_space<vmem>>, %arg3: memref<1x128xf32, #tpu.memory_space<vmem>>, %arg4: memref<32x128xf32, #tpu.memory_space<vmem>>) attributes {dimension_semantics = [#tpu.dimension_semantics<parallel>], iteration_bounds = array<i64: 2>, scalar_prefetch = 0 : i64, scratch_operands = 0 : i64, tpu.core_type = #tpu.core_type<tc>, window_params = [{transform_indices = @transform_0, window_bounds = array<i64: 32, 32>}, {pipeline_mode = #tpu.pipeline_mode<synchronous>, transform_indices = @transform_1, window_bounds = array<i64: 32, 128>}, {pipeline_mode = #tpu.pipeline_mode<synchronous>, transform_indices = @transform_2, window_bounds = array<i64: 1, 128>}, {transform_indices = @transform_3, window_bounds = array<i64: 32, 128>}]} {
    %c0 = arith.constant 0 : index
    %c0_0 = arith.constant 0 : index
    %0 = vector.load %arg1[%c0, %c0_0] : memref<32x32xbf16, #tpu.memory_space<vmem>>, vector<32x32xbf16>
    %c0_1 = arith.constant 0 : index
    %c0_2 = arith.constant 0 : index
    %1 = vector.load %arg2[%c0_1, %c0_2] : memref<32x128xbf16, #tpu.memory_space<vmem>>, vector<32x128xbf16>
    %cst = arith.constant dense<0.000000e+00> : vector<32x128xf32>
    %2 = tpu.matmul %0, %1, %cst {dimension_numbers = #tpu.dot_dimension_numbers<[1], [0], [0], [1], [0, 0, 1, 1], [], []>} : vector<32x32xbf16>, vector<32x128xbf16>, vector<32x128xf32> -> vector<32x128xf32>
    %c0_3 = arith.constant 0 : index
    %c0_4 = arith.constant 0 : index
    %3 = vector.load %arg3[%c0_3, %c0_4] : memref<1x128xf32, #tpu.memory_space<vmem>>, vector<1x128xf32>
    %4 = vector.broadcast %3 : vector<1x128xf32> to vector<32x128xf32>
    %5 = arith.addf %2, %4 : vector<32x128xf32>
    %c0_5 = arith.constant 0 : index
    %c0_6 = arith.constant 0 : index
    %6 = vector.load %arg4[%c0_5, %c0_6] : memref<32x128xf32, #tpu.memory_space<vmem>>, vector<32x128xf32>
    tpu.vector_store %arg4[%c0_5, %c0_6], %5 {strides = array<i32>} : memref<32x128xf32, #tpu.memory_space<vmem>>, vector<32x128xf32>,
    return
  }
  func.func @transform_0(%arg0: i32) -> (i32, i32) {
    %c0_i32 = arith.constant 0 : i32
    %c0_i32_0 = arith.constant 0 : i32
    return %arg0, %c0_i32 : i32, i32
  }
  func.func @transform_1(%arg0: i32) -> (i32, i32) {
    %c0_i32 = arith.constant 0 : i32
    %c0_i32_0 = arith.constant 0 : i32
    %c0_i32_1 = arith.constant 0 : i32
    return %c0_i32, %c0_i32_0 : i32, i32
  }
  func.func @transform_2(%arg0: i32) -> (i32, i32) {
    %c0_i32 = arith.constant 0 : i32
    %c0_i32_0 = arith.constant 0 : i32
    %c0_i32_1 = arith.constant 0 : i32
    return %c0_i32, %c0_i32_0 : i32, i32
  }
  func.func @transform_3(%arg0: i32) -> (i32, i32) {
    %c0_i32 = arith.constant 0 : i32
    %c0_i32_0 = arith.constant 0 : i32
    return %arg0, %c0_i32 : i32, i32
  }
}

</mosaic_0001>

<bundles_post_ra>
// kernel: tpu_custom_call.1
= control target key start
LH: loop header
LB: loop body
LE: loop exit
PB: predicated region body
PF: predicated region fallthrough
CT: control target
= control target key end

     0   :  { %8 = vsyncpa [#allocation3], 0  ;;  %s621_s0 = inlined_call_operand.vmem [shape: bf16[64,32], index: 0, kind: input, shape index: {}]   ;;  %s622_s1 = inlined_call_operand.vmem [shape: bf16[32,128], index: 1, kind: input, shape index: {}]   ;;  %s623_s2 = inlined_call_operand.vmem [shape: f32[1,128], index: 2, kind: input, shape index: {}]   ;;  %s624_s3 = inlined_call_operand.hbm [shape: f32[64,128], index: 3, kind: output, shape index: {}]  }
   0x1   :  { %10 = vsyncpa [#allocation3 + $0x1], 0  ;;  %s510_s12 = smov 0   ;;  %s512_s13 = smov 0  }
   0x2   :  { %s514_s14 = smov 0   ;;  %s516_s15 = smov 0  }
   0x3 LB: > { %s531_s16 = sadd.s32 4294967295, %s485_s15   ;;  %s346_s17 = sadd.s32 4294967294, %s485_s15   ;;  %s485_s15 = sphi %s516_s15, %s630_s15   ;;  %s481_s14 = sphi %s514_s14, %s629_s14   ;;  %s477_s13 = sphi %s512_s13, %s628_s13   ;;  %s473_s12 = sphi %s510_s12, %s627_s12  }
   0x4   : > { %s535_s18 = sadd.s32 1, %s485_s15   ;;  %s91_s19 = sadd.s32 1, %s481_s14 }
   0x5   : > { %s88_s20 = ssub.s32 %s485_s15, %s535_s18  ;;  %p101_p0 = scmp.ne.s32.totalorder %s481_s14, %s477_s13 }
   0x6   : > { %p89_p1 = scmp.eq.s32.totalorder %s88_s20, 0  ;;  %p102_p2 = scmp.eq.s32.totalorder %s531_s16, 1 }
   0x7   : > { %p107_p3 = scmp.ne.s32.totalorder %s477_s13, %s473_s12  ;;  %p108_p4 = scmp.eq.s32.totalorder %s346_s17, 1 }
   0x8   : > { %s546_s21 = scalar_select %p89_p1, %s481_s14, %s91_s19  }
   0x9   : > { %p548_p5 = por %p102_p2, %p101_p0  ;;  %p552_p6 = por %p108_p4, %p107_p3 }
   0xa   : > { %p349_p7 = scmp.ge.s32.totalorder %s485_s15, 1  ;;  %p141_p8 = scmp.lt.s32.totalorder %s485_s15, 3 }
   0xc   : > { %p142_p9 = pnand %p349_p7, %p141_p8 }
   0xd   : > { %v419_v0 = vld [vmem:[%s622_s1] sm:$0xff] (!%p142_p9)   ;;  %s351_s26 = sshll.u32 (!%p142_p9), %s531_s16, 2  ;;  %v420_v1 = vld [vmem:[%s622_s1 + $0x8] sm:$0xff] (!%p142_p9)   ;;  %vm210_vm0 = vcmask (!%p142_p9), 261120   ;;  %s162_s6 = sand.u32 (!%p142_p9), 1, %s477_s13  }
   0xe   : > { %145 = sbr.rel (%p142_p9) target bundleno = 258 (0x102), region = 32  ;;  %p166_p10 = scmp.lt.s32.totalorder (!%p142_p9), %s351_s26, 7  ;;  %370 = vmatprep.subr.bf16.mxu0 (!%p142_p9), %v419_v0  ;;  %v353_v4 = vld [vmem:[%s623_s2] ss:$0 sm:$0xff] (!%p142_p9) }
   0xf   : > { %371 = vmatpush3.bf16.msra.mxu0 (!%p142_p9), %v419_v0  ;;  %s350_s7 = sshll.u32 (!%p142_p9), %s162_s6, 5  ;;  %s365_s17 = sshll.u32 (!%p142_p9), %s531_s16, 9 }
  0x10   : > { %372 = vmatprep.subr.bf16.mxu0 (!%p142_p9), %v420_v1  ;;  %s164_s10 = scalar_lea.vmem (!%p142_p9), [#allocation2], %s350_s7  ;;  %s578_s24 = scalar_lea.hbm (!%p142_p9), %s624_s3, %s365_s17 }
  0x11   : > { %s284_s11 = sshll.u32 (!%p142_p9), %s164_s10, 4  ;;  %s580_s16 = scalar_lea.sflag (!%p142_p9), [#allocation3], %s162_s6  ;;  %s573_s11 = int_to_ptr.vmem [resolvable:$true] %s284_s11 }
  0x12   : > { %s423_s25 = scalar_lea.vmem (!%p142_p9), %s573_s11, 512 }
  0x13   : > { %373 = vmatpush3.bf16.msra.mxu0 (!%p142_p9), %v420_v1  ;;  %p424_p11 = scmp.ne.s32.totalorder (!%p142_p9), %s573_s11, %s423_s25 }
  0x15   : > { %s632_s26 = smov (!%p166_p10, %s351_s26), 7  ;;  %p425_p12 = pnand %p424_p11, %p548_p5 }
  0x16   : > { %s352_s29 = sshll.u32 %s632_s26, 2  ;;  %s487_s26 = smov [#allocation2]  }
  0x17   : > { %s169_s5 = scalar_lea.vmem %s621_s0, %s352_s29  ;;  %p426_p13 = pneg %p425_p12 }
  0x18   : > { %v421_v2 = vld [vmem:[%s169_s5] sm:$0xff]   ;;  %v422_v3 = vld [vmem:[%s169_s5 + $0x8] sm:$0xff]   ;;  %s427_s27 = sshll.u32 %s487_s26, 4  ;;  %s428_s27 = int_to_ptr.vmem [resolvable:$false] %s427_s27 }
  0x19   : > { %374 = vmatprep.mubr.msk.bf16.mxu0 %vm210_vm0, %v421_v2  ;;  %s429_s28 = scalar_lea.vmem %s428_s27, 1024  ;;  %p430_p0 = scmp.lt.s32.totalorder %s573_s11, %s428_s27 }
  0x1a   : > { %375 = vmatmul.mubr.msk.bf16.vlgmr.msra.gmra.mrb[0].mxu0 %vm210_vm0, %v422_v3  ;;  %p431_p1 = scmp.lt.s32.totalorder %s429_s28, %s423_s25 }
  0x1c   : > { %p432_p2 = por %p431_p1, %p430_p0 }
  0x1e   : > { %p433_p3 = pnand %p432_p2, %p426_p13 }
  0xed   : > { %v376_v5 = vpop.f32.mrb[0].mxu0 }
  0xee   : > { %v260_v6 = vadd.f32 %v376_v5, %v353_v4  ;;  %v251_v7 = vpop.f32.mrb[1].mxu0 }
  0xef   : > { %v252_v8 = vadd.f32 %v353_v4, %v251_v7  ;;  %v377_v9 = vpop.f32.mrb[2].mxu0 }
  0xf0   : > { %268 = vst [vmem:[%s164_s10 + $0x10] sm:$0xff] %v260_v6  ;;  %v263_v10 = vadd.f32 %v377_v9, %v353_v4  ;;  %v254_v11 = vpop.f32.mrb[3].mxu0 }
  0xf1   : > { %266 = vst [vmem:[%s164_s10] sm:$0xff] %v252_v8  ;;  %v255_v12 = vadd.f32 %v353_v4, %v254_v11 }
  0xf2   : > { %269 = vst [vmem:[%s164_s10 + $0x18] sm:$0xff] %v263_v10 }
  0xf3   : > { %267 = vst [vmem:[%s164_s10 + $0x8] sm:$0xff] %v255_v12 }
  0xf4   : > { %436 = shalt.err (!%p433_p3)
}
  0xf5   : > { %s437_s29 = scalar_lea.hbm %s578_s24, 512  ;;  %s441_s5 = scalar_lea.hbm %s624_s3, 1024 }
  0xf6   : > { %p438_p4 = scmp.ne.s32.totalorder %s578_s24, %s437_s29  ;;  %p442_p9 = scmp.lt.u32.totalorder %s578_s24, %s624_s3 }
  0xf7   : > { %p443_p10 = scmp.lt.u32.totalorder %s441_s5, %s437_s29  ;;  %p445_p12 = scmp.lt.u32.totalorder %s437_s29, %s578_s24 }
  0xf8   : > { %p439_p7 = pnand %p438_p4, %p548_p5 }
  0xf9   : > { %p444_p11 = por %p443_p10, %p442_p9 }
  0xfa   : > { %p440_p8 = pneg %p439_p7 }
  0xfb   : > { %p446_p13 = por %p445_p12, %p444_p11 }
  0xfd   : > { %p447_p0 = pnand %p446_p13, %p440_p8 }
  0xff   : > { %450 = shalt.err (!%p447_p0)
}
 0x100   : > { %s488_s8 = smov 128   ;;  %s489_s9 = smov 8  }
 0x101   : > { %378 = dma.vmem_to_hbm [thread:$0]  (%p548_p5), %s573_s11, 512, %s578_s24, %s580_s16, %s488_s8, %s488_s8, %s489_s9  }
 0x102 PF: > { %p384_p1 = scmp.ge.s32.totalorder %s485_s15, 2  ;;  %s299_s10 = sand.u32 1, %s473_s12  }
 0x103   : > { %s300_s17 = scalar_lea.sflag [#allocation3], %s299_s10 }
 0x104   : > { %p381_p2 = pnand %p384_p1, %p552_p6 }
 0x106   : > { %468 = dma.done.wait (!%p381_p2), %s300_s17, 512  }
 0x107   : > { %470 = vsyncadd (!%p381_p2), %s300_s17, 4294966784  ;;  %p13_p3 = scmp.ge.s32.totalorder %s535_s18, 4   ;;  %s627_s12 = smov %s477_s13 }
 0x108   : > { %s628_s13 = smov %s481_s14  ;;  %s629_s14 = smov %s546_s21 }
 0x109   : > { %s630_s15 = smov %s535_s18  ;;  %15 = sbr.rel (!%p13_p3) target bundleno = 3 (0x3), region = 67 }
 0x110   :  { %305 = vsyncpa [#allocation3], 1 }
 0x111   :  { %307 = vsyncpa [#allocation3 + $0x1], 1 }

</bundles_post_ra>
